<compile_context>
chip_gen: v5e
topology: v5e:2x2
jax: 0.10.0
libtpu: 0.0.40
codegen_flags: <defaults>
</compile_context>

<pallas_src>
import jax
import jax.numpy as jnp
from jax.experimental import pallas as pl
from jax.experimental.pallas import tpu as pltpu


# ---------------------------------------------------------------------------
# Kernels
# ---------------------------------------------------------------------------

def _linear_kernel(x_ref, w_ref, b_ref, o_ref):
    """Full-K resident weight: one MXU dot (f32 acc) + f32 bias add."""
    o_ref[...] = (
        jnp.dot(x_ref[...], w_ref[...], preferred_element_type=jnp.float32)
        + b_ref[...]
    ).astype(o_ref.dtype)


def _linear_kernel_ktiled(x_ref, w_ref, b_ref, o_ref, acc_ref):
    """K-tiled fallback: f32 accumulator across the (arbitrary) K grid axis."""
    k = pl.program_id(1)

    @pl.when(k == 0)
    def _():
        acc_ref[...] = jnp.zeros_like(acc_ref)

    acc_ref[...] += jnp.dot(x_ref[...], w_ref[...],
                            preferred_element_type=jnp.float32)

    @pl.when(k == pl.num_programs(1) - 1)
    def _():
        o_ref[...] = (acc_ref[...] + b_ref[...]).astype(o_ref.dtype)


# ---------------------------------------------------------------------------
# Tiling / VMEM helpers
# ---------------------------------------------------------------------------

def _ceil_to(v, m):
    return -(-v // m) * m


def _vmem_need_bytes(bm, bk, csize, osize, k_tiled):
    """Rough per-core VMEM working set for the chosen tiling."""
    lanes = 128
    rows = max(bm, 8)
    x_b = 2 * bm * bk * csize          # double-buffered x tile
    w_b = 2 * bk * lanes * csize       # (bk, 5) lane-padded to (bk, 128), 2 bufs
    b_b = 2 * 8 * lanes * 4            # bias (padded), 2 bufs
    o_b = 2 * rows * lanes * osize     # lane-padded output tile, 2 bufs
    a_b = rows * lanes * 4 if k_tiled else 0
    return x_b + w_b + b_b + o_b + a_b


def _vmem_capacity_bytes():
    try:
        return int(pltpu.get_tpu_info().vmem_capacity_bytes)
    except Exception:
        return 64 * 1024 * 1024        # conservative: v7x per-TensorCore VMEM


def _pick_block_k(K, bm, csize, osize, budget):
    """Largest bk that divides K, is a multiple of 128, and fits the budget."""
    units = K // 128
    for d in range(units, 0, -1):
        if units % d:
            continue
        bk = 128 * d
        if _vmem_need_bytes(bm, bk, csize, osize, k_tiled=(bk < K)) <= budget:
            return bk
    return 128


# ---------------------------------------------------------------------------
# Wrapper
# ---------------------------------------------------------------------------

def part4_forward(x, w_t, b, *, block_m=512, compute_dtype=jnp.bfloat16,
                  vmem_budget_bytes=None):
    """y = x @ w_t + b.   x: (M, K), w_t: (K, N), b: (N,)  ->  (M, N)."""
    M, K = x.shape
    Kw, N = w_t.shape
    assert K == Kw and b.shape == (N,)

    out_dtype = x.dtype
    # bf16 inputs halve the dominant HBM traffic; accumulation stays f32.
    xc = x.astype(compute_dtype)
    wc = w_t.astype(compute_dtype)
    bf = b.astype(jnp.float32).reshape(1, N)

    csize = jnp.dtype(compute_dtype).itemsize
    osize = jnp.dtype(out_dtype).itemsize

    vmem_cap = _vmem_capacity_bytes()
    budget = (vmem_budget_bytes if vmem_budget_bytes is not None
              else int(0.55 * vmem_cap))

    # --- M (batch) tiling ---------------------------------------------------
    block_m = max(8, _ceil_to(block_m, 8))
    if M >= 16:
        # >= 2 row blocks so the "parallel" axis splits across v7x's two cores;
        # ragged M handled by cdiv + Pallas masking of the partial last block.
        bm = min(block_m, _ceil_to(pl.cdiv(M, 2), 8))
    else:
        bm = M
    grid_m = pl.cdiv(M, bm)

    # --- K (feature) tiling fallback -----------------------------------------
    bk = K
    if K % 128 == 0 and _vmem_need_bytes(bm, K, csize, osize, False) > budget:
        bk = _pick_block_k(K, bm, csize, osize, budget)
    k_tiled = bk < K

    need = _vmem_need_bytes(bm, bk, csize, osize, k_tiled)
    # Right-size the scoped-VMEM limit: working set + compiler-scratch headroom,
    # never the whole physical VMEM (v7x only has 64 MiB per TensorCore).
    vmem_limit = min(max(32 * 1024 * 1024, need + 16 * 1024 * 1024),
                     int(0.75 * vmem_cap))

    out_shape = jax.ShapeDtypeStruct((M, N), out_dtype)

    if not k_tiled:
        grid_spec = pltpu.PrefetchScalarGridSpec(
            num_scalar_prefetch=0,
            grid=(grid_m,),
            in_specs=[
                pl.BlockSpec((bm, K), lambda i: (i, 0)),   # rows of x
                pl.BlockSpec((K, N), lambda i: (0, 0)),    # full weight, resident
                pl.BlockSpec((1, N), lambda i: (0, 0)),    # bias, resident
            ],
            out_specs=pl.BlockSpec((bm, N), lambda i: (i, 0)),
        )
        kernel = _linear_kernel
        dim_sem = ("parallel",)
    else:
        grid_k = K // bk
        grid_spec = pltpu.PrefetchScalarGridSpec(
            num_scalar_prefetch=0,
            grid=(grid_m, grid_k),                          # reduction axis last
            in_specs=[
                pl.BlockSpec((bm, bk), lambda i, k: (i, k)),
                pl.BlockSpec((bk, N), lambda i, k: (k, 0)),
                pl.BlockSpec((1, N), lambda i, k: (0, 0)),
            ],
            out_specs=pl.BlockSpec((bm, N), lambda i, k: (i, 0)),
            scratch_shapes=[pltpu.VMEM((bm, N), jnp.float32)],
        )
        kernel = _linear_kernel_ktiled
        dim_sem = ("parallel", "arbitrary")

    return pl.pallas_call(
        kernel,
        out_shape=out_shape,
        grid_spec=grid_spec,
        compiler_params=pltpu.CompilerParams(
            dimension_semantics=dim_sem,
            vmem_limit_bytes=vmem_limit,
        ),
    )(xc, wc, bf)


# ---------------------------------------------------------------------------
# Demo / self-check
# ---------------------------------------------------------------------------

if __name__ == "__main__":
    N_chn = 1                 # in_features = 4480 * N_chn
    in_features = 4480 * N_chn
    out_features = 5
    batch = 2

    key = jax.random.PRNGKey(0)
    kx, kw, kb = jax.random.split(key, 3)

    # Deterministic synthetic parameters (PyTorch shape: W is (5, in_features))
    bound = 1.0 / (in_features ** 0.5)
    W = jax.random.uniform(kw, (out_features, in_features),
                           minval=-bound, maxval=bound, dtype=jnp.float32)
    b = jax.random.uniform(kb, (out_features,),
                           minval=-bound, maxval=bound, dtype=jnp.float32)
    x = jax.random.normal(kx, (batch, in_features), dtype=jnp.float32)

    # Kernel expects (K, N) weight; y = x @ W.T + b == x @ w_t + b
    w_t = W.T

    y = jax.block_until_ready(part4_forward(x, w_t, b))
    assert y.shape == (batch, out_features)

    # Reference on the same bf16-rounded inputs (kernel computes bf16*bf16 -> f32)
    xr = x.astype(jnp.bfloat16).astype(jnp.float32)
    wr = w_t.astype(jnp.bfloat16).astype(jnp.float32)
    y_ref = xr @ wr + b
    assert jnp.allclose(y, y_ref, atol=5e-3, rtol=5e-3)

    # Loose check against the full-f32 reference (bf16-input rounding only)
    y_f32 = x @ w_t + b
    assert jnp.allclose(y, y_f32, atol=5e-2, rtol=5e-2)

    # Exercise the ragged-M + K-tiled accumulator fallback (as would trigger for
    # large N_chn on v7x) by forcing a tiny tiling budget.
    M2, K2 = 18, 4480 * 2
    x2 = jax.random.normal(jax.random.PRNGKey(1), (M2, K2), dtype=jnp.float32)
    w2 = jax.random.uniform(jax.random.PRNGKey(2), (K2, out_features),
                            minval=-0.01, maxval=0.01, dtype=jnp.float32)
    y2 = jax.block_until_ready(
        part4_forward(x2, w2, b, vmem_budget_bytes=2 * 1024 * 1024))
    y2_ref = (x2.astype(jnp.bfloat16).astype(jnp.float32)
              @ w2.astype(jnp.bfloat16).astype(jnp.float32) + b)
    assert y2.shape == (M2, out_features)
    assert jnp.allclose(y2, y2_ref, atol=5e-3, rtol=5e-3)

    print("KERNEL_OK")
</pallas_src>

<mosaic_0001>
module attributes {stable_mosaic.version = 11 : i64} {
  func.func @_linear_kernel(%arg0: i32, %arg1: memref<2x4480xbf16, #tpu.memory_space<vmem>>, %arg2: memref<4480x5xbf16, #tpu.memory_space<vmem>>, %arg3: memref<1x5xf32, #tpu.memory_space<vmem>>, %arg4: memref<2x5xf32, #tpu.memory_space<vmem>>) attributes {dimension_semantics = [#tpu.dimension_semantics<parallel>], iteration_bounds = array<i64: 1>, scalar_prefetch = 0 : i64, scratch_operands = 0 : i64, tpu.core_type = #tpu.core_type<tc>, window_params = [{transform_indices = @transform_0, window_bounds = array<i64: 2, 4480>}, {pipeline_mode = #tpu.pipeline_mode<synchronous>, transform_indices = @transform_1, window_bounds = array<i64: 4480, 5>}, {pipeline_mode = #tpu.pipeline_mode<synchronous>, transform_indices = @transform_2, window_bounds = array<i64: 1, 5>}, {transform_indices = @transform_3, window_bounds = array<i64: 2, 5>}]} {
    %c0 = arith.constant 0 : index
    %c0_0 = arith.constant 0 : index
    %0 = vector.load %arg1[%c0, %c0_0] : memref<2x4480xbf16, #tpu.memory_space<vmem>>, vector<2x4480xbf16>
    %c0_1 = arith.constant 0 : index
    %c0_2 = arith.constant 0 : index
    %1 = vector.load %arg2[%c0_1, %c0_2] : memref<4480x5xbf16, #tpu.memory_space<vmem>>, vector<4480x5xbf16>
    %cst = arith.constant dense<0.000000e+00> : vector<2x5xf32>
    %2 = tpu.matmul %0, %1, %cst {dimension_numbers = #tpu.dot_dimension_numbers<[1], [0], [0], [1], [0, 0, 1, 1], [], []>} : vector<2x4480xbf16>, vector<4480x5xbf16>, vector<2x5xf32> -> vector<2x5xf32>
    %c0_3 = arith.constant 0 : index
    %c0_4 = arith.constant 0 : index
    %3 = vector.load %arg3[%c0_3, %c0_4] : memref<1x5xf32, #tpu.memory_space<vmem>>, vector<1x5xf32>
    %4 = vector.broadcast %3 : vector<1x5xf32> to vector<2x5xf32>
    %5 = arith.addf %2, %4 : vector<2x5xf32>
    %c0_5 = arith.constant 0 : index
    %c0_6 = arith.constant 0 : index
    %6 = vector.load %arg4[%c0_5, %c0_6] : memref<2x5xf32, #tpu.memory_space<vmem>>, vector<2x5xf32>
    tpu.vector_store %arg4[%c0_5, %c0_6], %5 {strides = array<i32>} : memref<2x5xf32, #tpu.memory_space<vmem>>, vector<2x5xf32>,
    return
  }
  func.func @transform_0(%arg0: i32) -> (i32, i32) {
    %c0_i32 = arith.constant 0 : i32
    %c0_i32_0 = arith.constant 0 : i32
    return %arg0, %c0_i32 : i32, i32
  }
  func.func @transform_1(%arg0: i32) -> (i32, i32) {
    %c0_i32 = arith.constant 0 : i32
    %c0_i32_0 = arith.constant 0 : i32
    %c0_i32_1 = arith.constant 0 : i32
    return %c0_i32, %c0_i32_0 : i32, i32
  }
  func.func @transform_2(%arg0: i32) -> (i32, i32) {
    %c0_i32 = arith.constant 0 : i32
    %c0_i32_0 = arith.constant 0 : i32
    %c0_i32_1 = arith.constant 0 : i32
    return %c0_i32, %c0_i32_0 : i32, i32
  }
  func.func @transform_3(%arg0: i32) -> (i32, i32) {
    %c0_i32 = arith.constant 0 : i32
    %c0_i32_0 = arith.constant 0 : i32
    return %arg0, %c0_i32 : i32, i32
  }
}

</mosaic_0001>

<bundles_post_ra>
// kernel: tpu_custom_call.1
= control target key start
LH: loop header
LB: loop body
LE: loop exit
PB: predicated region body
PF: predicated region fallthrough
CT: control target
= control target key end

     0   :  { %s5130_s0 = inlined_call_operand.vmem [shape: bf16[2,4480], index: 0, kind: input, shape index: {}]   ;;  %s5131_s1 = inlined_call_operand.vmem [shape: bf16[4480,5], index: 1, kind: input, shape index: {}]   ;;  %s5132_s2 = inlined_call_operand.vmem [shape: f32[1,5], index: 2, kind: input, shape index: {}]   ;;  %s5133_s3 = inlined_call_operand.hbm [shape: f32[2,5], index: 3, kind: output, shape index: {}]  }
   0x1   :  { %v3944_v0 = vld [vmem:[%s5131_s1 + $0x38] sm:$0xff]  ;;  %v3943_v4 = vld [vmem:[%s5131_s1 + $0x30] sm:$0xff]  ;;  %v3942_v8 = vld [vmem:[%s5131_s1 + $0x28] sm:$0xff] }
   0x2   :  { %v3952_v1 = vld [vmem:[%s5131_s1 + $0x78] sm:$0xff]  ;;  %2344 = vmatpush.bf16.msra.mxu0 %v3944_v0  ;;  %v3951_v5 = vld [vmem:[%s5131_s1 + $0x70] sm:$0xff]  ;;  %v3950_v9 = vld [vmem:[%s5131_s1 + $0x68] sm:$0xff] }
   0x3   :  { %v3960_v2 = vld [vmem:[%s5131_s1 + $0xb8] sm:$0xff]  ;;  %2357 = vmatpush.bf16.msra.mxu1 %v3952_v1  ;;  %v3959_v6 = vld [vmem:[%s5131_s1 + $0xb0] sm:$0xff]  ;;  %v3958_v10 = vld [vmem:[%s5131_s1 + $0xa8] sm:$0xff] }
   0x4   :  { %v3968_v3 = vld [vmem:[%s5131_s1 + $0xf8] sm:$0xff]  ;;  %2370 = vmatpush.bf16.msra.mxu2 %v3960_v2  ;;  %v3967_v7 = vld [vmem:[%s5131_s1 + $0xf0] sm:$0xff]  ;;  %v3966_v11 = vld [vmem:[%s5131_s1 + $0xe8] sm:$0xff] }
   0x5   :  { %2383 = vmatpush.bf16.msra.mxu3 %v3968_v3  ;;  %v3941_v12 = vld [vmem:[%s5131_s1 + $0x20] sm:$0xff]  ;;  %v3940_v16 = vld [vmem:[%s5131_s1 + $0x18] sm:$0xff]  ;;  %v3939_v21 = vld [vmem:[%s5131_s1 + $0x10] sm:$0xff] }
   0x6   :  { %2345 = vmatpush.bf16.msra.mxu0 %v3943_v4  ;;  %v3949_v13 = vld [vmem:[%s5131_s1 + $0x60] sm:$0xff]  ;;  %v3948_v17 = vld [vmem:[%s5131_s1 + $0x58] sm:$0xff]  ;;  %v3947_v22 = vld [vmem:[%s5131_s1 + $0x50] sm:$0xff] }
   0x7   :  { %2358 = vmatpush.bf16.msra.mxu1 %v3951_v5  ;;  %v3957_v14 = vld [vmem:[%s5131_s1 + $0xa0] sm:$0xff]  ;;  %v3956_v18 = vld [vmem:[%s5131_s1 + $0x98] sm:$0xff]  ;;  %v3955_v23 = vld [vmem:[%s5131_s1 + $0x90] sm:$0xff] }
   0x8   :  { %2371 = vmatpush.bf16.msra.mxu2 %v3959_v6  ;;  %v3965_v15 = vld [vmem:[%s5131_s1 + $0xe0] sm:$0xff]  ;;  %v3964_v19 = vld [vmem:[%s5131_s1 + $0xd8] sm:$0xff]  ;;  %v3963_v24 = vld [vmem:[%s5131_s1 + $0xd0] sm:$0xff] }
   0x9   :  { %2384 = vmatpush.bf16.msra.mxu3 %v3967_v7  ;;  %v15_v20 = vld [vmem:[%s5130_s0] sm:$0xff] }
   0xa   :  { %2346 = vmatpush.bf16.msra.mxu0 %v3942_v8  ;;  %585 = vst [vmem:[#allocation1] ss:$9 sm:$0xff] %v15_v20 }
   0xb   :  { %2359 = vmatpush.bf16.msra.mxu1 %v3950_v9 }
   0xc   :  { %2372 = vmatpush.bf16.msra.mxu2 %v3958_v10 }
   0xd   :  { %2385 = vmatpush.bf16.msra.mxu3 %v3966_v11 }
   0xe   :  { %2347 = vmatpush.bf16.msra.mxu0 %v3941_v12 }
   0xf   :  { %2360 = vmatpush.bf16.msra.mxu1 %v3949_v13 }
  0x10   :  { %2373 = vmatpush.bf16.msra.mxu2 %v3957_v14 }
  0x11   :  { %2386 = vmatpush.bf16.msra.mxu3 %v3965_v15 }
  0x12   :  { %2348 = vmatpush.bf16.msra.mxu0 %v3940_v16 }
  0x13   :  { %2361 = vmatpush.bf16.msra.mxu1 %v3948_v17 }
  0x14   :  { %2374 = vmatpush.bf16.msra.mxu2 %v3956_v18 }
  0x15   :  { %2387 = vmatpush.bf16.msra.mxu3 %v3964_v19 }
  0x16   :  { %8 = vsyncpa [#allocation3], 0  ;;  %2349 = vmatpush.bf16.msra.mxu0 %v3939_v21  ;;  %v3938_v25 = vld [vmem:[%s5131_s1 + $0x8] sm:$0xff]  ;;  %v3937_v29 = vld [vmem:[%s5131_s1] sm:$0xff]  ;;  %s2808_s10 = sshll.u32 %s5133_s3, 4  ;;  %vm2799_vm0 = vcmask 33792   ;;  %s2809_s10 = int_to_ptr.hbm [resolvable:$true] %s2808_s10 }
  0x17   :  { %2362 = vmatpush.bf16.msra.mxu1 %v3947_v22  ;;  %v3946_v26 = vld [vmem:[%s5131_s1 + $0x48] sm:$0xff]  ;;  %v3945_v30 = vld [vmem:[%s5131_s1 + $0x40] sm:$0xff]  ;;  %v3976_v32 = vld [vmem:[%s5131_s1 + $0x138] sm:$0xff] }
  0x18   :  { %2375 = vmatpush.bf16.msra.mxu2 %v3955_v23  ;;  %v3954_v27 = vld [vmem:[%s5131_s1 + $0x88] sm:$0xff]  ;;  %v3953_v31 = vld [vmem:[%s5131_s1 + $0x80] sm:$0xff]  ;;  %v3984_v33 = vld [vmem:[%s5131_s1 + $0x178] sm:$0xff] }
  0x19   :  { %2388 = vmatpush.bf16.msra.mxu3 %v3963_v24  ;;  %v3962_v28 = vld [vmem:[%s5131_s1 + $0xc8] sm:$0xff]  ;;  %v3992_v34 = vld [vmem:[%s5131_s1 + $0x1b8] sm:$0xff]  ;;  %v3961_v35 = vld [vmem:[%s5131_s1 + $0xc0] sm:$0xff] }
  0x1a   :  { %2350 = vmatpush.bf16.msra.mxu0 %v3938_v25  ;;  %v4000_v36 = vld [vmem:[%s5131_s1 + $0x1f8] sm:$0xff]  ;;  %v586_v37 = vld [vmem:[#allocation1] sm:$0xff]  ;;  %v3975_v38 = vld [vmem:[%s5131_s1 + $0x130] sm:$0xff] }
  0x1b   :  { %2363 = vmatpush.bf16.msra.mxu1 %v3946_v26  ;;  %v588_v39 = vld [vmem:[#allocation1 + $0x12] sm:$0xff]  ;;  %v587_v42 = vld [vmem:[#allocation1 + $0x9] sm:$0xff]  ;;  %v589_v44 = vld [vmem:[#allocation1 + $0x1b] sm:$0xff] }
  0x1c   :  { %2376 = vmatpush.bf16.msra.mxu2 %v3954_v27  ;;  %v3983_v40 = vld [vmem:[%s5131_s1 + $0x170] sm:$0xff]  ;;  %v3974_v45 = vld [vmem:[%s5131_s1 + $0x128] sm:$0xff]  ;;  %v3973_v49 = vld [vmem:[%s5131_s1 + $0x120] sm:$0xff] }
  0x1d   :  { %2389 = vmatpush.bf16.msra.mxu3 %v3962_v28  ;;  %v3991_v41 = vld [vmem:[%s5131_s1 + $0x1b0] sm:$0xff]  ;;  %v3982_v46 = vld [vmem:[%s5131_s1 + $0x168] sm:$0xff]  ;;  %v4404_v52 = vld [vmem:[#allocation1 + $0x3f] sm:$0xff] }
  0x1e   :  { %2351 = vmatpush.bf16.msra.mxu0 %v3937_v29  ;;  %v3999_v43 = vld [vmem:[%s5131_s1 + $0x1f0] sm:$0xff]  ;;  %v3990_v47 = vld [vmem:[%s5131_s1 + $0x1a8] sm:$0xff]  ;;  %v3981_v55 = vld [vmem:[%s5131_s1 + $0x160] sm:$0xff] }
  0x1f   :  { %2364 = vmatpush.bf16.msra.mxu1 %v3945_v30  ;;  %v3998_v48 = vld [vmem:[%s5131_s1 + $0x1e8] sm:$0xff]  ;;  %v592_v50 = vld [vmem:[#allocation1 + $0x36] sm:$0xff]  ;;  %v3989_v56 = vld [vmem:[%s5131_s1 + $0x1a0] sm:$0xff] }
  0x20   :  { %2377 = vmatpush.bf16.msra.mxu2 %v3953_v31  ;;  %v590_v51 = vld [vmem:[#allocation1 + $0x24] sm:$0xff]  ;;  %v591_v54 = vld [vmem:[#allocation1 + $0x2d] sm:$0xff]  ;;  %v3972_v58 = vld [vmem:[%s5131_s1 + $0x118] sm:$0xff] }
  0x21   :  { %2390 = vmatpush.bf16.msra.mxu3 %v3961_v35  ;;  %2352 = vmatmul.bf16.vlgmr.msra.gmra.mxu0 %v586_v37  ;;  %v16_v53 = vld [vmem:[%s5130_s0 + $0x8] sm:$0xff]  ;;  %v3997_v57 = vld [vmem:[%s5131_s1 + $0x1e0] sm:$0xff]  ;;  %v3980_v59 = vld [vmem:[%s5131_s1 + $0x158] sm:$0xff] }
  0x22   :  { %2396 = vmatpush.bf16.msrb.mxu0 %v3976_v32  ;;  %2365 = vmatmul.bf16.vlgmr.msra.gmra.mxu1 %v587_v42  ;;  %595 = vst [vmem:[#allocation1] ss:$9 sm:$0xff] %v16_v53  ;;  %v3988_v60 = vld [vmem:[%s5131_s1 + $0x198] sm:$0xff]  ;;  %v3971_v62 = vld [vmem:[%s5131_s1 + $0x110] sm:$0xff]  ;;  %v3970_v2 = vld [vmem:[%s5131_s1 + $0x108] sm:$0xff] }
  0x23   :  { %2409 = vmatpush.bf16.msrb.mxu1 %v3984_v33  ;;  %2378 = vmatmul.bf16.vlgmr.msra.gmra.mxu2 %v588_v39  ;;  %v3996_v61 = vld [vmem:[%s5131_s1 + $0x1d8] sm:$0xff]  ;;  %v3979_v63 = vld [vmem:[%s5131_s1 + $0x150] sm:$0xff]  ;;  %v3978_v3 = vld [vmem:[%s5131_s1 + $0x148] sm:$0xff] }
  0x24   :  { %2422 = vmatpush.bf16.msrb.mxu2 %v3992_v34  ;;  %2391 = vmatmul.bf16.vlgmr.msra.gmra.mxu3 %v589_v44  ;;  %v3987_v0 = vld [vmem:[%s5131_s1 + $0x190] sm:$0xff]  ;;  %v3986_v4 = vld [vmem:[%s5131_s1 + $0x188] sm:$0xff]  ;;  %v3969_v6 = vld [vmem:[%s5131_s1 + $0x100] sm:$0xff] }
  0x25   :  { %2435 = vmatpush.bf16.msrb.mxu3 %v4000_v36  ;;  %v3995_v1 = vld [vmem:[%s5131_s1 + $0x1d0] sm:$0xff]  ;;  %v3994_v5 = vld [vmem:[%s5131_s1 + $0x1c8] sm:$0xff]  ;;  %v3977_v7 = vld [vmem:[%s5131_s1 + $0x140] sm:$0xff] }
  0x26   :  { %2397 = vmatpush.bf16.msrb.mxu0 %v3975_v38  ;;  %v3985_v8 = vld [vmem:[%s5131_s1 + $0x180] sm:$0xff]  ;;  %v4008_v9 = vld [vmem:[%s5131_s1 + $0x238] sm:$0xff]  ;;  %v4007_v14 = vld [vmem:[%s5131_s1 + $0x230] sm:$0xff] }
  0x27   :  { %2410 = vmatpush.bf16.msrb.mxu1 %v3983_v40  ;;  %v4016_v10 = vld [vmem:[%s5131_s1 + $0x278] sm:$0xff]  ;;  %v3993_v12 = vld [vmem:[%s5131_s1 + $0x1c0] sm:$0xff]  ;;  %v4015_v15 = vld [vmem:[%s5131_s1 + $0x270] sm:$0xff] }
  0x28   :  { %2423 = vmatpush.bf16.msrb.mxu2 %v3991_v41  ;;  %v4024_v11 = vld [vmem:[%s5131_s1 + $0x2b8] sm:$0xff]  ;;  %v4023_v16 = vld [vmem:[%s5131_s1 + $0x2b0] sm:$0xff]  ;;  %v4006_v18 = vld [vmem:[%s5131_s1 + $0x228] sm:$0xff] }
  0x29   :  { %2436 = vmatpush.bf16.msrb.mxu3 %v3999_v43  ;;  %v4032_v13 = vld [vmem:[%s5131_s1 + $0x2f8] sm:$0xff]  ;;  %v4031_v17 = vld [vmem:[%s5131_s1 + $0x2f0] sm:$0xff]  ;;  %v4014_v19 = vld [vmem:[%s5131_s1 + $0x268] sm:$0xff] }
  0x2a   :  { %2398 = vmatpush.bf16.msrb.mxu0 %v3974_v45  ;;  %v4022_v20 = vld [vmem:[%s5131_s1 + $0x2a8] sm:$0xff]  ;;  %v4005_v22 = vld [vmem:[%s5131_s1 + $0x220] sm:$0xff]  ;;  %v4004_v26 = vld [vmem:[%s5131_s1 + $0x218] sm:$0xff] }
  0x2b   :  { %2411 = vmatpush.bf16.msrb.mxu1 %v3982_v46  ;;  %v4030_v21 = vld [vmem:[%s5131_s1 + $0x2e8] sm:$0xff]  ;;  %v4013_v23 = vld [vmem:[%s5131_s1 + $0x260] sm:$0xff]  ;;  %v4012_v27 = vld [vmem:[%s5131_s1 + $0x258] sm:$0xff] }
  0x2c   :  { %2424 = vmatpush.bf16.msrb.mxu2 %v3990_v47  ;;  %v4021_v24 = vld [vmem:[%s5131_s1 + $0x2a0] sm:$0xff]  ;;  %v4020_v28 = vld [vmem:[%s5131_s1 + $0x298] sm:$0xff]  ;;  %v4003_v30 = vld [vmem:[%s5131_s1 + $0x210] sm:$0xff] }
  0x2d   :  { %2437 = vmatpush.bf16.msrb.mxu3 %v3998_v48  ;;  %v4029_v25 = vld [vmem:[%s5131_s1 + $0x2e0] sm:$0xff]  ;;  %v4028_v29 = vld [vmem:[%s5131_s1 + $0x2d8] sm:$0xff]  ;;  %v4011_v31 = vld [vmem:[%s5131_s1 + $0x250] sm:$0xff] }
  0x2e   :  { %2399 = vmatpush.bf16.msrb.mxu0 %v3973_v49  ;;  %v4019_v32 = vld [vmem:[%s5131_s1 + $0x290] sm:$0xff]  ;;  %v4002_v34 = vld [vmem:[%s5131_s1 + $0x208] sm:$0xff]  ;;  %v4001_v38 = vld [vmem:[%s5131_s1 + $0x200] sm:$0xff] }
  0x2f   :  { %2412 = vmatpush.bf16.msrb.mxu1 %v3981_v55  ;;  %v4027_v33 = vld [vmem:[%s5131_s1 + $0x2d0] sm:$0xff]  ;;  %v4010_v35 = vld [vmem:[%s5131_s1 + $0x248] sm:$0xff]  ;;  %v4009_v39 = vld [vmem:[%s5131_s1 + $0x240] sm:$0xff] }
  0x30   :  { %2425 = vmatpush.bf16.msrb.mxu2 %v3989_v56  ;;  %v4018_v36 = vld [vmem:[%s5131_s1 + $0x288] sm:$0xff]  ;;  %v4017_v40 = vld [vmem:[%s5131_s1 + $0x280] sm:$0xff]  ;;  %v4040_v41 = vld [vmem:[%s5131_s1 + $0x338] sm:$0xff] }
  0x31   :  { %2438 = vmatpush.bf16.msrb.mxu3 %v3997_v57  ;;  %v4026_v37 = vld [vmem:[%s5131_s1 + $0x2c8] sm:$0xff]  ;;  %v4048_v42 = vld [vmem:[%s5131_s1 + $0x378] sm:$0xff]  ;;  %v4025_v44 = vld [vmem:[%s5131_s1 + $0x2c0] sm:$0xff] }
  0x32   :  { %2400 = vmatpush.bf16.msrb.mxu0 %v3972_v58  ;;  %v4056_v43 = vld [vmem:[%s5131_s1 + $0x3b8] sm:$0xff]  ;;  %v596_v45 = vld [vmem:[#allocation1] sm:$0xff]  ;;  %v4039_v48 = vld [vmem:[%s5131_s1 + $0x330] sm:$0xff] }
  0x33   :  { %2413 = vmatpush.bf16.msrb.mxu1 %v3980_v59  ;;  %v4064_v46 = vld [vmem:[%s5131_s1 + $0x3f8] sm:$0xff]  ;;  %v597_v49 = vld [vmem:[#allocation1 + $0x9] sm:$0xff]  ;;  %v4037_v58 = vld [vmem:[%s5131_s1 + $0x320] sm:$0xff] }
  0x34   :  { %2426 = vmatpush.bf16.msrb.mxu2 %v3988_v60  ;;  %v598_v47 = vld [vmem:[#allocation1 + $0x12] sm:$0xff]  ;;  %v4046_v55 = vld [vmem:[%s5131_s1 + $0x368] sm:$0xff]  ;;  %v4045_v59 = vld [vmem:[%s5131_s1 + $0x360] sm:$0xff] }
  0x35   :  { %2439 = vmatpush.bf16.msrb.mxu3 %v3996_v61  ;;  %v4063_v53 = vld [vmem:[%s5131_s1 + $0x3f0] sm:$0xff]  ;;  %v4054_v56 = vld [vmem:[%s5131_s1 + $0x3a8] sm:$0xff]  ;;  %v4053_v60 = vld [vmem:[%s5131_s1 + $0x3a0] sm:$0xff] }
  0x36   :  { %2401 = vmatpush.bf16.msrb.mxu0 %v3971_v62  ;;  %v4062_v57 = vld [vmem:[%s5131_s1 + $0x3e8] sm:$0xff]  ;;  %v4061_v61 = vld [vmem:[%s5131_s1 + $0x3e0] sm:$0xff]  ;;  %v4036_v62 = vld [vmem:[%s5131_s1 + $0x318] sm:$0xff] }
  0x37   :  { %2414 = vmatpush.bf16.msrb.mxu1 %v3979_v63  ;;  %v4044_v63 = vld [vmem:[%s5131_s1 + $0x358] sm:$0xff] }
  0x38   :  { %2427 = vmatpush.bf16.msrb.mxu2 %v3987_v0  ;;  %v4052_v0 = vld [vmem:[%s5131_s1 + $0x398] sm:$0xff] }
  0x39   :  { %2440 = vmatpush.bf16.msrb.mxu3 %v3995_v1  ;;  %v4060_v1 = vld [vmem:[%s5131_s1 + $0x3d8] sm:$0xff] }
  0x3a   :  { %2402 = vmatpush.bf16.msrb.mxu0 %v3970_v2  ;;  %v4035_v2 = vld [vmem:[%s5131_s1 + $0x310] sm:$0xff] }
  0x3b   :  { %2415 = vmatpush.bf16.msrb.mxu1 %v3978_v3  ;;  %v4043_v3 = vld [vmem:[%s5131_s1 + $0x350] sm:$0xff] }
  0x3c   :  { %2428 = vmatpush.bf16.msrb.mxu2 %v3986_v4  ;;  %v4051_v4 = vld [vmem:[%s5131_s1 + $0x390] sm:$0xff] }
  0x3d   :  { %2441 = vmatpush.bf16.msrb.mxu3 %v3994_v5  ;;  %v4059_v5 = vld [vmem:[%s5131_s1 + $0x3d0] sm:$0xff] }
  0x3e   :  { %2403 = vmatpush.bf16.msrb.mxu0 %v3969_v6  ;;  %v4034_v6 = vld [vmem:[%s5131_s1 + $0x308] sm:$0xff] }
  0x3f   :  { %2416 = vmatpush.bf16.msrb.mxu1 %v3977_v7  ;;  %v4042_v7 = vld [vmem:[%s5131_s1 + $0x348] sm:$0xff] }
  0x40   :  { %2429 = vmatpush.bf16.msrb.mxu2 %v3985_v8  ;;  %v4050_v8 = vld [vmem:[%s5131_s1 + $0x388] sm:$0xff] }
  0x41   :  { %2442 = vmatpush.bf16.msrb.mxu3 %v3993_v12  ;;  %2404 = vmatmul.bf16.vlgmr.msrb.gmra.mxu0 %v590_v51  ;;  %v599_v51 = vld [vmem:[#allocation1 + $0x1b] sm:$0xff] }
  0x42   :  { %2448 = vmatpush.bf16.msra.mxu0 %v4008_v9  ;;  %2417 = vmatmul.bf16.vlgmr.msrb.gmra.mxu1 %v591_v54  ;;  %v4038_v54 = vld [vmem:[%s5131_s1 + $0x328] sm:$0xff]  ;;  %v603_v12 = vld [vmem:[#allocation1 + $0x3f] sm:$0xff] }
  0x43   :  { %2461 = vmatpush.bf16.msra.mxu1 %v4016_v10  ;;  %2430 = vmatmul.bf16.vlgmr.msrb.gmra.mxu2 %v592_v50  ;;  %v4047_v50 = vld [vmem:[%s5131_s1 + $0x370] sm:$0xff]  ;;  %v600_v9 = vld [vmem:[#allocation1 + $0x24] sm:$0xff] }
  0x44   :  { %2474 = vmatpush.bf16.msra.mxu2 %v4024_v11  ;;  %2443 = vmatmul.bf16.vlgmr.msrb.gmra.mxu3 %v4404_v52  ;;  %v4055_v52 = vld [vmem:[%s5131_s1 + $0x3b0] sm:$0xff] }
  0x45   :  { %2487 = vmatpush.bf16.msra.mxu3 %v4032_v13  ;;  %v602_v10 = vld [vmem:[#allocation1 + $0x36] sm:$0xff]  ;;  %v601_v11 = vld [vmem:[#allocation1 + $0x2d] sm:$0xff] }
  0x46   :  { %2449 = vmatpush.bf16.msra.mxu0 %v4007_v14  ;;  %v17_v13 = vld [vmem:[%s5130_s0 + $0x10] sm:$0xff]  ;;  %v4058_v14 = vld [vmem:[%s5131_s1 + $0x3c8] sm:$0xff] }
  0x47   :  { %2462 = vmatpush.bf16.msra.mxu1 %v4015_v15  ;;  %605 = vst [vmem:[#allocation1] ss:$9 sm:$0xff] %v17_v13  ;;  %v4033_v15 = vld [vmem:[%s5131_s1 + $0x300] sm:$0xff]  ;;  %v4108_v13 = vld [vmem:[%s5131_s1 + $0x558] sm:$0xff] }
  0x48   :  { %2475 = vmatpush.bf16.msra.mxu2 %v4023_v16  ;;  %v4041_v16 = vld [vmem:[%s5131_s1 + $0x340] sm:$0xff] }
  0x49   :  { %2488 = vmatpush.bf16.msra.mxu3 %v4031_v17  ;;  %v4072_v17 = vld [vmem:[%s5131_s1 + $0x438] sm:$0xff] }
  0x4a   :  { %2450 = vmatpush.bf16.msra.mxu0 %v4006_v18  ;;  %v4049_v18 = vld [vmem:[%s5131_s1 + $0x380] sm:$0xff] }
  0x4b   :  { %2463 = vmatpush.bf16.msra.mxu1 %v4014_v19  ;;  %v4080_v19 = vld [vmem:[%s5131_s1 + $0x478] sm:$0xff] }
  0x4c   :  { %2476 = vmatpush.bf16.msra.mxu2 %v4022_v20  ;;  %v4088_v20 = vld [vmem:[%s5131_s1 + $0x4b8] sm:$0xff] }
  0x4d   :  { %2489 = vmatpush.bf16.msra.mxu3 %v4030_v21  ;;  %v4057_v21 = vld [vmem:[%s5131_s1 + $0x3c0] sm:$0xff] }
  0x4e   :  { %2451 = vmatpush.bf16.msra.mxu0 %v4005_v22  ;;  %v4096_v22 = vld [vmem:[%s5131_s1 + $0x4f8] sm:$0xff] }
  0x4f   :  { %2464 = vmatpush.bf16.msra.mxu1 %v4013_v23  ;;  %v4071_v23 = vld [vmem:[%s5131_s1 + $0x430] sm:$0xff] }
  0x50   :  { %2477 = vmatpush.bf16.msra.mxu2 %v4021_v24  ;;  %v4079_v24 = vld [vmem:[%s5131_s1 + $0x470] sm:$0xff] }
  0x51   :  { %2490 = vmatpush.bf16.msra.mxu3 %v4029_v25  ;;  %v4087_v25 = vld [vmem:[%s5131_s1 + $0x4b0] sm:$0xff] }
  0x52   :  { %2452 = vmatpush.bf16.msra.mxu0 %v4004_v26  ;;  %v4095_v26 = vld [vmem:[%s5131_s1 + $0x4f0] sm:$0xff] }
  0x53   :  { %2465 = vmatpush.bf16.msra.mxu1 %v4012_v27  ;;  %v4070_v27 = vld [vmem:[%s5131_s1 + $0x428] sm:$0xff] }
  0x54   :  { %2478 = vmatpush.bf16.msra.mxu2 %v4020_v28  ;;  %v4078_v28 = vld [vmem:[%s5131_s1 + $0x468] sm:$0xff] }
  0x55   :  { %2491 = vmatpush.bf16.msra.mxu3 %v4028_v29  ;;  %v4086_v29 = vld [vmem:[%s5131_s1 + $0x4a8] sm:$0xff] }
  0x56   :  { %2453 = vmatpush.bf16.msra.mxu0 %v4003_v30  ;;  %v4094_v30 = vld [vmem:[%s5131_s1 + $0x4e8] sm:$0xff] }
  0x57   :  { %2466 = vmatpush.bf16.msra.mxu1 %v4011_v31  ;;  %v4069_v31 = vld [vmem:[%s5131_s1 + $0x420] sm:$0xff] }
  0x58   :  { %2479 = vmatpush.bf16.msra.mxu2 %v4019_v32  ;;  %v4077_v32 = vld [vmem:[%s5131_s1 + $0x460] sm:$0xff] }
  0x59   :  { %2492 = vmatpush.bf16.msra.mxu3 %v4027_v33  ;;  %v4085_v33 = vld [vmem:[%s5131_s1 + $0x4a0] sm:$0xff] }
  0x5a   :  { %2454 = vmatpush.bf16.msra.mxu0 %v4002_v34  ;;  %v4093_v34 = vld [vmem:[%s5131_s1 + $0x4e0] sm:$0xff] }
  0x5b   :  { %2467 = vmatpush.bf16.msra.mxu1 %v4010_v35  ;;  %v4068_v35 = vld [vmem:[%s5131_s1 + $0x418] sm:$0xff] }
  0x5c   :  { %2480 = vmatpush.bf16.msra.mxu2 %v4018_v36  ;;  %v4076_v36 = vld [vmem:[%s5131_s1 + $0x458] sm:$0xff] }
  0x5d   :  { %2493 = vmatpush.bf16.msra.mxu3 %v4026_v37  ;;  %v4084_v37 = vld [vmem:[%s5131_s1 + $0x498] sm:$0xff] }
  0x5e   :  { %2455 = vmatpush.bf16.msra.mxu0 %v4001_v38  ;;  %v4092_v38 = vld [vmem:[%s5131_s1 + $0x4d8] sm:$0xff] }
  0x5f   :  { %2468 = vmatpush.bf16.msra.mxu1 %v4009_v39  ;;  %v4067_v39 = vld [vmem:[%s5131_s1 + $0x410] sm:$0xff] }
  0x60   :  { %2481 = vmatpush.bf16.msra.mxu2 %v4017_v40  ;;  %v4075_v40 = vld [vmem:[%s5131_s1 + $0x450] sm:$0xff] }
  0x61   :  { %2494 = vmatpush.bf16.msra.mxu3 %v4025_v44  ;;  %2456 = vmatmul.bf16.vlgmr.msra.gmra.mxu0 %v596_v45  ;;  %v4074_v44 = vld [vmem:[%s5131_s1 + $0x448] sm:$0xff] }
  0x62   :  { %2500 = vmatpush.bf16.msrb.mxu0 %v4040_v41  ;;  %2469 = vmatmul.bf16.vlgmr.msra.gmra.mxu1 %v597_v49  ;;  %v4083_v41 = vld [vmem:[%s5131_s1 + $0x490] sm:$0xff]  ;;  %v4082_v45 = vld [vmem:[%s5131_s1 + $0x488] sm:$0xff]  ;;  %v4081_v49 = vld [vmem:[%s5131_s1 + $0x480] sm:$0xff] }
  0x63   :  { %2513 = vmatpush.bf16.msrb.mxu1 %v4048_v42  ;;  %2482 = vmatmul.bf16.vlgmr.msra.gmra.mxu2 %v598_v47  ;;  %v4091_v42 = vld [vmem:[%s5131_s1 + $0x4d0] sm:$0xff]  ;;  %v4065_v47 = vld [vmem:[%s5131_s1 + $0x400] sm:$0xff] }
  0x64   :  { %2526 = vmatpush.bf16.msrb.mxu2 %v4056_v43  ;;  %2495 = vmatmul.bf16.vlgmr.msra.gmra.mxu3 %v599_v51  ;;  %v4066_v43 = vld [vmem:[%s5131_s1 + $0x408] sm:$0xff]  ;;  %v4112_v51 = vld [vmem:[%s5131_s1 + $0x578] sm:$0xff] }
  0x65   :  { %2539 = vmatpush.bf16.msrb.mxu3 %v4064_v46  ;;  %v4090_v46 = vld [vmem:[%s5131_s1 + $0x4c8] sm:$0xff] }
  0x66   :  { %2501 = vmatpush.bf16.msrb.mxu0 %v4039_v48  ;;  %v4073_v48 = vld [vmem:[%s5131_s1 + $0x440] sm:$0xff] }
  0x67   :  { %2514 = vmatpush.bf16.msrb.mxu1 %v4047_v50  ;;  %v4104_v50 = vld [vmem:[%s5131_s1 + $0x538] sm:$0xff] }
  0x68   :  { %2527 = vmatpush.bf16.msrb.mxu2 %v4055_v52  ;;  %v4120_v52 = vld [vmem:[%s5131_s1 + $0x5b8] sm:$0xff] }
  0x69   :  { %2540 = vmatpush.bf16.msrb.mxu3 %v4063_v53  ;;  %v4089_v53 = vld [vmem:[%s5131_s1 + $0x4c0] sm:$0xff] }
  0x6a   :  { %2502 = vmatpush.bf16.msrb.mxu0 %v4038_v54  ;;  %v606_v54 = vld [vmem:[#allocation1] sm:$0xff] }
  0x6b   :  { %2515 = vmatpush.bf16.msrb.mxu1 %v4046_v55  ;;  %v608_v55 = vld [vmem:[#allocation1 + $0x12] sm:$0xff] }
  0x6c   :  { %2528 = vmatpush.bf16.msrb.mxu2 %v4054_v56  ;;  %v4128_v56 = vld [vmem:[%s5131_s1 + $0x5f8] sm:$0xff] }
  0x6d   :  { %2541 = vmatpush.bf16.msrb.mxu3 %v4062_v57  ;;  %v607_v57 = vld [vmem:[#allocation1 + $0x9] sm:$0xff] }
  0x6e   :  { %2503 = vmatpush.bf16.msrb.mxu0 %v4037_v58  ;;  %v4103_v58 = vld [vmem:[%s5131_s1 + $0x530] sm:$0xff] }
  0x6f   :  { %2516 = vmatpush.bf16.msrb.mxu1 %v4045_v59  ;;  %v609_v59 = vld [vmem:[#allocation1 + $0x1b] sm:$0xff] }
  0x70   :  { %2529 = vmatpush.bf16.msrb.mxu2 %v4053_v60  ;;  %v4111_v60 = vld [vmem:[%s5131_s1 + $0x570] sm:$0xff] }
  0x71   :  { %2542 = vmatpush.bf16.msrb.mxu3 %v4061_v61  ;;  %v4119_v61 = vld [vmem:[%s5131_s1 + $0x5b0] sm:$0xff] }
  0x72   :  { %2504 = vmatpush.bf16.msrb.mxu0 %v4036_v62  ;;  %v4127_v62 = vld [vmem:[%s5131_s1 + $0x5f0] sm:$0xff] }
  0x73   :  { %2517 = vmatpush.bf16.msrb.mxu1 %v4044_v63  ;;  %v4102_v63 = vld [vmem:[%s5131_s1 + $0x528] sm:$0xff] }
  0x74   :  { %2530 = vmatpush.bf16.msrb.mxu2 %v4052_v0  ;;  %v4110_v0 = vld [vmem:[%s5131_s1 + $0x568] sm:$0xff] }
  0x75   :  { %2543 = vmatpush.bf16.msrb.mxu3 %v4060_v1  ;;  %v4118_v1 = vld [vmem:[%s5131_s1 + $0x5a8] sm:$0xff] }
  0x76   :  { %2505 = vmatpush.bf16.msrb.mxu0 %v4035_v2  ;;  %v4218_v2 = vld [vmem:[%s5132_s2] ss:$0 sm:$0xff] }
  0x77   :  { %2518 = vmatpush.bf16.msrb.mxu1 %v4043_v3  ;;  %v4126_v3 = vld [vmem:[%s5131_s1 + $0x5e8] sm:$0xff] }
  0x78   :  { %2531 = vmatpush.bf16.msrb.mxu2 %v4051_v4  ;;  %v4101_v4 = vld [vmem:[%s5131_s1 + $0x520] sm:$0xff] }
  0x79   :  { %2544 = vmatpush.bf16.msrb.mxu3 %v4059_v5 }
  0x7a   :  { %2506 = vmatpush.bf16.msrb.mxu0 %v4034_v6  ;;  %v4109_v6 = vld [vmem:[%s5131_s1 + $0x560] sm:$0xff] }
  0x7b   :  { %2519 = vmatpush.bf16.msrb.mxu1 %v4042_v7  ;;  %v4117_v7 = vld [vmem:[%s5131_s1 + $0x5a0] sm:$0xff] }
  0x7c   :  { %2532 = vmatpush.bf16.msrb.mxu2 %v4050_v8 }
  0x7d   :  { %2545 = vmatpush.bf16.msrb.mxu3 %v4058_v14  ;;  %v4116_v14 = vld [vmem:[%s5131_s1 + $0x598] sm:$0xff] }
  0x7e   :  { %2507 = vmatpush.bf16.msrb.mxu0 %v4033_v15  ;;  %v4124_v15 = vld [vmem:[%s5131_s1 + $0x5d8] sm:$0xff] }
  0x7f   :  { %2520 = vmatpush.bf16.msrb.mxu1 %v4041_v16 }
  0x80   :  { %2533 = vmatpush.bf16.msrb.mxu2 %v4049_v18 }
  0x81   :  { %2546 = vmatpush.bf16.msrb.mxu3 %v4057_v21  ;;  %2508 = vmatmul.bf16.vlgmr.msrb.gmra.mxu0 %v600_v9  ;;  %v4115_v21 = vld [vmem:[%s5131_s1 + $0x590] sm:$0xff] }
  0x82   :  { %2552 = vmatpush.bf16.msra.mxu0 %v4072_v17  ;;  %2521 = vmatmul.bf16.vlgmr.msrb.gmra.mxu1 %v601_v11  ;;  %v4099_v17 = vld [vmem:[%s5131_s1 + $0x510] sm:$0xff] }
  0x83   :  { %2565 = vmatpush.bf16.msra.mxu1 %v4080_v19  ;;  %2534 = vmatmul.bf16.vlgmr.msrb.gmra.mxu2 %v602_v10  ;;  %v4125_v10 = vld [vmem:[%s5131_s1 + $0x5e0] sm:$0xff] }
  0x84   :  { %2578 = vmatpush.bf16.msra.mxu2 %v4088_v20  ;;  %2547 = vmatmul.bf16.vlgmr.msrb.gmra.mxu3 %v603_v12  ;;  %v4100_v12 = vld [vmem:[%s5131_s1 + $0x518] sm:$0xff]  ;;  %v4107_v20 = vld [vmem:[%s5131_s1 + $0x550] sm:$0xff] }
  0x85   :  { %2591 = vmatpush.bf16.msra.mxu3 %v4096_v22 }
  0x86   :  { %2553 = vmatpush.bf16.msra.mxu0 %v4071_v23 }
  0x87   :  { %2566 = vmatpush.bf16.msra.mxu1 %v4079_v24  ;;  %v4123_v24 = vld [vmem:[%s5131_s1 + $0x5d0] sm:$0xff] }
  0x88   :  { %2579 = vmatpush.bf16.msra.mxu2 %v4087_v25 }
  0x89   :  { %2592 = vmatpush.bf16.msra.mxu3 %v4095_v26  ;;  %v4098_v26 = vld [vmem:[%s5131_s1 + $0x508] sm:$0xff] }
  0x8a   :  { %2554 = vmatpush.bf16.msra.mxu0 %v4070_v27  ;;  %v4106_v27 = vld [vmem:[%s5131_s1 + $0x548] sm:$0xff] }
  0x8b   :  { %2567 = vmatpush.bf16.msra.mxu1 %v4078_v28  ;;  %v4114_v28 = vld [vmem:[%s5131_s1 + $0x588] sm:$0xff] }
  0x8c   :  { %2580 = vmatpush.bf16.msra.mxu2 %v4086_v29  ;;  %v610_v29 = vld [vmem:[#allocation1 + $0x24] sm:$0xff] }
  0x8d   :  { %2593 = vmatpush.bf16.msra.mxu3 %v4094_v30  ;;  %v612_v30 = vld [vmem:[#allocation1 + $0x36] sm:$0xff] }
  0x8e   :  { %2555 = vmatpush.bf16.msra.mxu0 %v4069_v31  ;;  %v611_v31 = vld [vmem:[#allocation1 + $0x2d] sm:$0xff] }
  0x8f   :  { %2568 = vmatpush.bf16.msra.mxu1 %v4077_v32  ;;  %v613_v32 = vld [vmem:[#allocation1 + $0x3f] sm:$0xff] }
  0x90   :  { %2581 = vmatpush.bf16.msra.mxu2 %v4085_v33  ;;  %v18_v33 = vld [vmem:[%s5130_s0 + $0x18] sm:$0xff] }
  0x91   :  { %2594 = vmatpush.bf16.msra.mxu3 %v4093_v34  ;;  %v4122_v34 = vld [vmem:[%s5131_s1 + $0x5c8] sm:$0xff]  ;;  %615 = vst [vmem:[#allocation1] ss:$9 sm:$0xff] %v18_v33 }
  0x92   :  { %2556 = vmatpush.bf16.msra.mxu0 %v4068_v35  ;;  %v4166_v33 = vld [vmem:[%s5131_s1 + $0x728] sm:$0xff] }
  0x93   :  { %2569 = vmatpush.bf16.msra.mxu1 %v4076_v36  ;;  %v4097_v36 = vld [vmem:[%s5131_s1 + $0x500] sm:$0xff] }
  0x94   :  { %2582 = vmatpush.bf16.msra.mxu2 %v4084_v37  ;;  %v4105_v37 = vld [vmem:[%s5131_s1 + $0x540] sm:$0xff] }
  0x95   :  { %2595 = vmatpush.bf16.msra.mxu3 %v4092_v38  ;;  %v4113_v38 = vld [vmem:[%s5131_s1 + $0x580] sm:$0xff] }
  0x96   :  { %2557 = vmatpush.bf16.msra.mxu0 %v4067_v39  ;;  %v4136_v39 = vld [vmem:[%s5131_s1 + $0x638] sm:$0xff] }
  0x97   :  { %2570 = vmatpush.bf16.msra.mxu1 %v4075_v40  ;;  %v4144_v40 = vld [vmem:[%s5131_s1 + $0x678] sm:$0xff] }
  0x98   :  { %2583 = vmatpush.bf16.msra.mxu2 %v4083_v41 }
  0x99   :  { %2596 = vmatpush.bf16.msra.mxu3 %v4091_v42  ;;  %v4152_v42 = vld [vmem:[%s5131_s1 + $0x6b8] sm:$0xff] }
  0x9a   :  { %2558 = vmatpush.bf16.msra.mxu0 %v4066_v43  ;;  %v4121_v43 = vld [vmem:[%s5131_s1 + $0x5c0] sm:$0xff] }
  0x9b   :  { %2571 = vmatpush.bf16.msra.mxu1 %v4074_v44  ;;  %v4160_v44 = vld [vmem:[%s5131_s1 + $0x6f8] sm:$0xff] }
  0x9c   :  { %2584 = vmatpush.bf16.msra.mxu2 %v4082_v45  ;;  %v4135_v45 = vld [vmem:[%s5131_s1 + $0x630] sm:$0xff] }
  0x9d   :  { %2597 = vmatpush.bf16.msra.mxu3 %v4090_v46  ;;  %v4143_v46 = vld [vmem:[%s5131_s1 + $0x670] sm:$0xff] }
  0x9e   :  { %2559 = vmatpush.bf16.msra.mxu0 %v4065_v47  ;;  %v2353_v5 = vpop.f32.mrf.mxu0  ;;  %v4151_v47 = vld [vmem:[%s5131_s1 + $0x6b0] sm:$0xff] }
  0x9f   :  { %2572 = vmatpush.bf16.msra.mxu1 %v4073_v48  ;;  %v2354_v8 = vadd.f32 %v4218_v2, %v2353_v5  ;;  %v2366_v9 = vpop.f32.mrf.mxu1  ;;  %v4159_v48 = vld [vmem:[%s5131_s1 + $0x6f0] sm:$0xff] }
  0xa0   :  { %2585 = vmatpush.bf16.msra.mxu2 %v4081_v49  ;;  %v4134_v49 = vld [vmem:[%s5131_s1 + $0x628] sm:$0xff]  ;;  %v4147_v5 = vld [vmem:[%s5131_s1 + $0x690] sm:$0xff] }
  0xa1   :  { %2598 = vmatpush.bf16.msra.mxu3 %v4089_v53  ;;  %2560 = vmatmul.bf16.vlgmr.msra.gmra.mxu0 %v606_v54  ;;  %v2367_v11 = vadd.f32 %v2366_v9, %v2354_v8  ;;  %v4133_v53 = vld [vmem:[%s5131_s1 + $0x620] sm:$0xff] }
  0xa2   :  { %2604 = vmatpush.bf16.msrb.mxu0 %v4104_v50  ;;  %2573 = vmatmul.bf16.vlgmr.msra.gmra.mxu1 %v607_v57  ;;  %v4142_v50 = vld [vmem:[%s5131_s1 + $0x668] sm:$0xff]  ;;  %v4141_v54 = vld [vmem:[%s5131_s1 + $0x660] sm:$0xff] }
  0xa3   :  { %2617 = vmatpush.bf16.msrb.mxu1 %v4112_v51  ;;  %2586 = vmatmul.bf16.vlgmr.msra.gmra.mxu2 %v608_v55  ;;  %v4150_v51 = vld [vmem:[%s5131_s1 + $0x6a8] sm:$0xff]  ;;  %v4149_v55 = vld [vmem:[%s5131_s1 + $0x6a0] sm:$0xff] }
  0xa4   :  { %2630 = vmatpush.bf16.msrb.mxu2 %v4120_v52  ;;  %2599 = vmatmul.bf16.vlgmr.msra.gmra.mxu3 %v609_v59  ;;  %v4158_v52 = vld [vmem:[%s5131_s1 + $0x6e8] sm:$0xff]  ;;  %v4157_v59 = vld [vmem:[%s5131_s1 + $0x6e0] sm:$0xff] }
  0xa5   :  { %2643 = vmatpush.bf16.msrb.mxu3 %v4128_v56 }
  0xa6   :  { %2605 = vmatpush.bf16.msrb.mxu0 %v4103_v58  ;;  %v2379_v16 = vpop.f32.mrf.mxu2  ;;  %v2355_v19 = vpop.f32.mrf.mxu0 }
  0xa7   :  { %2618 = vmatpush.bf16.msrb.mxu1 %v4111_v60  ;;  %v2380_v18 = vadd.f32 %v2379_v16, %v2367_v11  ;;  %v2392_v22 = vpop.f32.mrf.mxu3  ;;  %v2368_v23 = vpop.f32.mrf.mxu1  ;;  %v4132_v60 = vld [vmem:[%s5131_s1 + $0x618] sm:$0xff]  ;;  %v4130_v11 = vld [vmem:[%s5131_s1 + $0x608] sm:$0xff]  ;;  %v4129_v16 = vld [vmem:[%s5131_s1 + $0x600] sm:$0xff] }
  0xa8   :  { %2631 = vmatpush.bf16.msrb.mxu2 %v4119_v61  ;;  %v4153_v23 = vld [vmem:[%s5131_s1 + $0x6c0] sm:$0xff] }
  0xa9   :  { %2644 = vmatpush.bf16.msrb.mxu3 %v4127_v62  ;;  %v2393_v25 = vadd.f32 %v2392_v22, %v2380_v18  ;;  %v4140_v62 = vld [vmem:[%s5131_s1 + $0x658] sm:$0xff]  ;;  %v4145_v18 = vld [vmem:[%s5131_s1 + $0x680] sm:$0xff] }
  0xaa   :  { %2606 = vmatpush.bf16.msrb.mxu0 %v4102_v63  ;;  %v4148_v63 = vld [vmem:[%s5131_s1 + $0x698] sm:$0xff] }
  0xab   :  { %2619 = vmatpush.bf16.msrb.mxu1 %v4110_v0  ;;  %v4184_v22 = vld [vmem:[%s5131_s1 + $0x7b8] sm:$0xff] }
  0xac   :  { %2632 = vmatpush.bf16.msrb.mxu2 %v4118_v1  ;;  %v4156_v1 = vld [vmem:[%s5131_s1 + $0x6d8] sm:$0xff] }
  0xad   :  { %2645 = vmatpush.bf16.msrb.mxu3 %v4126_v3  ;;  %v4131_v3 = vld [vmem:[%s5131_s1 + $0x610] sm:$0xff] }
  0xae   :  { %2607 = vmatpush.bf16.msrb.mxu0 %v4101_v4  ;;  %v2381_v35 = vpop.f32.mrf.mxu2  ;;  %v4139_v4 = vld [vmem:[%s5131_s1 + $0x650] sm:$0xff] }
  0xaf   :  { %2620 = vmatpush.bf16.msrb.mxu1 %v4109_v6  ;;  %v2394_v41 = vpop.f32.mrf.mxu3  ;;  %v4182_v35 = vld [vmem:[%s5131_s1 + $0x7a8] sm:$0xff] }
  0xb0   :  { %2633 = vmatpush.bf16.msrb.mxu2 %v4117_v7  ;;  %v4181_v41 = vld [vmem:[%s5131_s1 + $0x7a0] sm:$0xff] }
  0xb1   :  { %2646 = vmatpush.bf16.msrb.mxu3 %v4125_v10  ;;  %v4155_v10 = vld [vmem:[%s5131_s1 + $0x6d0] sm:$0xff] }
  0xb2   :  { %2608 = vmatpush.bf16.msrb.mxu0 %v4100_v12  ;;  %v4138_v12 = vld [vmem:[%s5131_s1 + $0x648] sm:$0xff] }
  0xb3   :  { %2621 = vmatpush.bf16.msrb.mxu1 %v4108_v13  ;;  %v4146_v13 = vld [vmem:[%s5131_s1 + $0x688] sm:$0xff] }
  0xb4   :  { %2634 = vmatpush.bf16.msrb.mxu2 %v4116_v14 }
  0xb5   :  { %2647 = vmatpush.bf16.msrb.mxu3 %v4124_v15  ;;  %v4154_v15 = vld [vmem:[%s5131_s1 + $0x6c8] sm:$0xff] }
  0xb6   :  { %2609 = vmatpush.bf16.msrb.mxu0 %v4099_v17  ;;  %v4137_v17 = vld [vmem:[%s5131_s1 + $0x640] sm:$0xff] }
  0xb7   :  { %2622 = vmatpush.bf16.msrb.mxu1 %v4107_v20  ;;  %v4168_v20 = vld [vmem:[%s5131_s1 + $0x738] sm:$0xff] }
  0xb8   :  { %2635 = vmatpush.bf16.msrb.mxu2 %v4115_v21  ;;  %v4176_v21 = vld [vmem:[%s5131_s1 + $0x778] sm:$0xff] }
  0xb9   :  { %2648 = vmatpush.bf16.msrb.mxu3 %v4123_v24  ;;  %v616_v24 = vld [vmem:[#allocation1] sm:$0xff] }
  0xba   :  { %2610 = vmatpush.bf16.msrb.mxu0 %v4098_v26  ;;  %v4192_v26 = vld [vmem:[%s5131_s1 + $0x7f8] sm:$0xff] }
  0xbb   :  { %2623 = vmatpush.bf16.msrb.mxu1 %v4106_v27  ;;  %v617_v27 = vld [vmem:[#allocation1 + $0x9] sm:$0xff] }
  0xbc   :  { %2636 = vmatpush.bf16.msrb.mxu2 %v4114_v28  ;;  %v4167_v28 = vld [vmem:[%s5131_s1 + $0x730] sm:$0xff] }
  0xbd   :  { %2649 = vmatpush.bf16.msrb.mxu3 %v4122_v34  ;;  %v4174_v34 = vld [vmem:[%s5131_s1 + $0x768] sm:$0xff] }
  0xbe   :  { %2611 = vmatpush.bf16.msrb.mxu0 %v4097_v36  ;;  %v2405_v56 = vpop.f32.mrf.mxu0  ;;  %v4190_v36 = vld [vmem:[%s5131_s1 + $0x7e8] sm:$0xff] }
  0xbf   :  { %2624 = vmatpush.bf16.msrb.mxu1 %v4105_v37  ;;  %v2418_v57 = vpop.f32.mrf.mxu1  ;;  %v2406_v58 = vadd.f32 %v2405_v56, %v2393_v25  ;;  %v618_v25 = vld [vmem:[#allocation1 + $0x12] sm:$0xff] }
  0xc0   :  { %2637 = vmatpush.bf16.msrb.mxu2 %v4113_v38  ;;  %v4179_v56 = vld [vmem:[%s5131_s1 + $0x790] sm:$0xff] }
  0xc1   :  { %2650 = vmatpush.bf16.msrb.mxu3 %v4121_v43  ;;  %2612 = vmatmul.bf16.vlgmr.msrb.gmra.mxu0 %v610_v29  ;;  %v2419_v61 = vadd.f32 %v2418_v57, %v2406_v58  ;;  %v619_v29 = vld [vmem:[#allocation1 + $0x1b] sm:$0xff]  ;;  %v4187_v58 = vld [vmem:[%s5131_s1 + $0x7d0] sm:$0xff] }
  0xc2   :  { %2656 = vmatpush.bf16.msra.mxu0 %v4136_v39  ;;  %2625 = vmatmul.bf16.vlgmr.msrb.gmra.mxu1 %v611_v31  ;;  %v4183_v31 = vld [vmem:[%s5131_s1 + $0x7b0] sm:$0xff]  ;;  %v4165_v39 = vld [vmem:[%s5131_s1 + $0x720] sm:$0xff] }
  0xc3   :  { %2669 = vmatpush.bf16.msra.mxu1 %v4144_v40  ;;  %2638 = vmatmul.bf16.vlgmr.msrb.gmra.mxu2 %v612_v30  ;;  %v4175_v30 = vld [vmem:[%s5131_s1 + $0x770] sm:$0xff]  ;;  %v4173_v40 = vld [vmem:[%s5131_s1 + $0x760] sm:$0xff] }
  0xc4   :  { %2682 = vmatpush.bf16.msra.mxu2 %v4152_v42  ;;  %2651 = vmatmul.bf16.vlgmr.msrb.gmra.mxu3 %v613_v32  ;;  %v4191_v32 = vld [vmem:[%s5131_s1 + $0x7f0] sm:$0xff] }
  0xc5   :  { %2695 = vmatpush.bf16.msra.mxu3 %v4160_v44  ;;  %v4189_v44 = vld [vmem:[%s5131_s1 + $0x7e0] sm:$0xff] }
  0xc6   :  { %2657 = vmatpush.bf16.msra.mxu0 %v4135_v45  ;;  %v2431_v0 = vpop.f32.mrf.mxu2  ;;  %v2407_v7 = vpop.f32.mrf.mxu0  ;;  %v4164_v45 = vld [vmem:[%s5131_s1 + $0x718] sm:$0xff] }
  0xc7   :  { %2670 = vmatpush.bf16.msra.mxu1 %v4143_v46  ;;  %v2432_v2 = vadd.f32 %v2431_v0, %v2419_v61  ;;  %v2444_v6 = vpop.f32.mrf.mxu3  ;;  %v2420_v9 = vpop.f32.mrf.mxu1  ;;  %v4172_v46 = vld [vmem:[%s5131_s1 + $0x758] sm:$0xff]  ;;  %v4178_v61 = vld [vmem:[%s5131_s1 + $0x788] sm:$0xff]  ;;  %v4169_v7 = vld [vmem:[%s5131_s1 + $0x740] sm:$0xff] }
  0xc8   :  { %2683 = vmatpush.bf16.msra.mxu2 %v4151_v47  ;;  %v4180_v47 = vld [vmem:[%s5131_s1 + $0x798] sm:$0xff]  ;;  %v621_v0 = vld [vmem:[#allocation1 + $0x2d] sm:$0xff] }
  0xc9   :  { %2696 = vmatpush.bf16.msra.mxu3 %v4159_v48  ;;  %v2445_v8 = vadd.f32 %v2444_v6, %v2432_v2  ;;  %v19_v2 = vld [vmem:[%s5130_s0 + $0x20] sm:$0x7]  ;;  %v4200_v9 = vld [vmem:[%s5131_s1 + $0x838] sm:$0xff] }
  0xca   :  { %2658 = vmatpush.bf16.msra.mxu0 %v4134_v49 }
  0xcb   :  { %2671 = vmatpush.bf16.msra.mxu1 %v4142_v50  ;;  %v4188_v50 = vld [vmem:[%s5131_s1 + $0x7d8] sm:$0xff] }
  0xcc   :  { %2684 = vmatpush.bf16.msra.mxu2 %v4150_v51 }
  0xcd   :  { %2697 = vmatpush.bf16.msra.mxu3 %v4158_v52 }
  0xce   :  { %2659 = vmatpush.bf16.msra.mxu0 %v4133_v53  ;;  %v2433_v14 = vpop.f32.mrf.mxu2  ;;  %v4163_v53 = vld [vmem:[%s5131_s1 + $0x710] sm:$0xff] }
  0xcf   :  { %2672 = vmatpush.bf16.msra.mxu1 %v4141_v54  ;;  %v2446_v19 = vpop.f32.mrf.mxu3  ;;  %v4207_v14 = vld [vmem:[%s5131_s1 + $0x870] sm:$0xff] }
  0xd0   :  { %2685 = vmatpush.bf16.msra.mxu2 %v4149_v55  ;;  %v4171_v55 = vld [vmem:[%s5131_s1 + $0x750] sm:$0xff] }
  0xd1   :  { %2698 = vmatpush.bf16.msra.mxu3 %v4157_v59  ;;  %v4162_v59 = vld [vmem:[%s5131_s1 + $0x708] sm:$0xff] }
  0xd2   :  { %2660 = vmatpush.bf16.msra.mxu0 %v4132_v60  ;;  %v4170_v60 = vld [vmem:[%s5131_s1 + $0x748] sm:$0xff] }
  0xd3   :  { %2673 = vmatpush.bf16.msra.mxu1 %v4140_v62  ;;  %v620_v62 = vld [vmem:[#allocation1 + $0x24] sm:$0xff] }
  0xd4   :  { %2686 = vmatpush.bf16.msra.mxu2 %v4148_v63  ;;  %v622_v63 = vld [vmem:[#allocation1 + $0x36] sm:$0xff] }
  0xd5   :  { %2699 = vmatpush.bf16.msra.mxu3 %v4156_v1  ;;  %v623_v1 = vld [vmem:[#allocation1 + $0x3f] sm:$0xff] }
  0xd6   :  { %2661 = vmatpush.bf16.msra.mxu0 %v4131_v3  ;;  %625 = vst [vmem:[#allocation1] ss:$9 sm:$0xff] %v19_v2 }
  0xd7   :  { %2674 = vmatpush.bf16.msra.mxu1 %v4139_v4  ;;  %v4186_v4 = vld [vmem:[%s5131_s1 + $0x7c8] sm:$0xff] }
  0xd8   :  { %2687 = vmatpush.bf16.msra.mxu2 %v4147_v5  ;;  %v4161_v5 = vld [vmem:[%s5131_s1 + $0x700] sm:$0xff] }
  0xd9   :  { %2700 = vmatpush.bf16.msra.mxu3 %v4155_v10  ;;  %v4208_v10 = vld [vmem:[%s5131_s1 + $0x878] sm:$0xff] }
  0xda   :  { %2662 = vmatpush.bf16.msra.mxu0 %v4130_v11  ;;  %v4216_v11 = vld [vmem:[%s5131_s1 + $0x8b8] sm:$0xff] }
  0xdb   :  { %2675 = vmatpush.bf16.msra.mxu1 %v4138_v12  ;;  %v4185_v12 = vld [vmem:[%s5131_s1 + $0x7c0] sm:$0xff] }
  0xdc   :  { %2688 = vmatpush.bf16.msra.mxu2 %v4146_v13  ;;  %v4199_v13 = vld [vmem:[%s5131_s1 + $0x830] sm:$0xff] }
  0xdd   :  { %2701 = vmatpush.bf16.msra.mxu3 %v4154_v15  ;;  %v4215_v15 = vld [vmem:[%s5131_s1 + $0x8b0] sm:$0xff] }
  0xde   :  { %2663 = vmatpush.bf16.msra.mxu0 %v4129_v16  ;;  %v2457_v37 = vpop.f32.mrf.mxu0  ;;  %v4198_v16 = vld [vmem:[%s5131_s1 + $0x828] sm:$0xff] }
  0xdf   :  { %2676 = vmatpush.bf16.msra.mxu1 %v4137_v17  ;;  %v2458_v38 = vadd.f32 %v2457_v37, %v2445_v8  ;;  %v2470_v42 = vpop.f32.mrf.mxu1  ;;  %v4177_v8 = vld [vmem:[%s5131_s1 + $0x780] sm:$0xff]  ;;  %v4206_v17 = vld [vmem:[%s5131_s1 + $0x868] sm:$0xff]  ;;  %v4211_v37 = vld [vmem:[%s5131_s1 + $0x890] sm:$0xff] }
  0xe0   :  { %2689 = vmatpush.bf16.msra.mxu2 %v4145_v18  ;;  %v4214_v18 = vld [vmem:[%s5131_s1 + $0x8a8] sm:$0xff] }
  0xe1   :  { %2702 = vmatpush.bf16.msra.mxu3 %v4153_v23  ;;  %2664 = vmatmul.bf16.vlgmr.msra.gmra.mxu0 %v616_v24  ;;  %v2471_v43 = vadd.f32 %v2470_v42, %v2458_v38  ;;  %v4205_v23 = vld [vmem:[%s5131_s1 + $0x860] sm:$0xff]  ;;  %v4194_v38 = vld [vmem:[%s5131_s1 + $0x808] sm:$0xff] }
  0xe2   :  { %2708 = vmatpush.bf16.msrb.mxu0 %v4168_v20  ;;  %2677 = vmatmul.bf16.vlgmr.msra.gmra.mxu1 %v617_v27  ;;  %v4213_v24 = vld [vmem:[%s5131_s1 + $0x8a0] sm:$0xff]  ;;  %v4204_v27 = vld [vmem:[%s5131_s1 + $0x858] sm:$0xff] }
  0xe3   :  { %2721 = vmatpush.bf16.msrb.mxu1 %v4176_v21  ;;  %2690 = vmatmul.bf16.vlgmr.msra.gmra.mxu2 %v618_v25  ;;  %v4197_v21 = vld [vmem:[%s5131_s1 + $0x820] sm:$0xff] }
  0xe4   :  { %2734 = vmatpush.bf16.msrb.mxu2 %v4184_v22  ;;  %2703 = vmatmul.bf16.vlgmr.msra.gmra.mxu3 %v619_v29 }
  0xe5   :  { %2747 = vmatpush.bf16.msrb.mxu3 %v4192_v26  ;;  %v4196_v26 = vld [vmem:[%s5131_s1 + $0x818] sm:$0xff] }
  0xe6   :  { %2709 = vmatpush.bf16.msrb.mxu0 %v4167_v28  ;;  %v2483_v48 = vpop.f32.mrf.mxu2  ;;  %v2459_v51 = vpop.f32.mrf.mxu0  ;;  %v4212_v28 = vld [vmem:[%s5131_s1 + $0x898] sm:$0xff] }
  0xe7   :  { %2722 = vmatpush.bf16.msrb.mxu1 %v4175_v30  ;;  %v2484_v49 = vadd.f32 %v2483_v48, %v2471_v43  ;;  %v2496_v52 = vpop.f32.mrf.mxu3  ;;  %v2472_v57 = vpop.f32.mrf.mxu1  ;;  %v4193_v43 = vld [vmem:[%s5131_s1 + $0x800] sm:$0xff]  ;;  %v628_v48 = vld [vmem:[#allocation1 + $0x12] sm:$0xff] }
  0xe8   :  { %2735 = vmatpush.bf16.msrb.mxu2 %v4183_v31 }
  0xe9   :  { %2748 = vmatpush.bf16.msrb.mxu3 %v4191_v32  ;;  %v2497_v54 = vadd.f32 %v2496_v52, %v2484_v49 }
  0xea   :  { %2710 = vmatpush.bf16.msrb.mxu0 %v4166_v33  ;;  %v4195_v33 = vld [vmem:[%s5131_s1 + $0x810] sm:$0xff] }
  0xeb   :  { %2723 = vmatpush.bf16.msrb.mxu1 %v4174_v34 }
  0xec   :  { %2736 = vmatpush.bf16.msrb.mxu2 %v4182_v35 }
  0xed   :  { %2749 = vmatpush.bf16.msrb.mxu3 %v4190_v36  ;;  %v4203_v36 = vld [vmem:[%s5131_s1 + $0x850] sm:$0xff] }
  0xee   :  { %2711 = vmatpush.bf16.msrb.mxu0 %v4165_v39  ;;  %v2485_v3 = vpop.f32.mrf.mxu2  ;;  %v4202_v39 = vld [vmem:[%s5131_s1 + $0x848] sm:$0xff] }
  0xef   :  { %2724 = vmatpush.bf16.msrb.mxu1 %v4173_v40  ;;  %v2498_v6 = vpop.f32.mrf.mxu3  ;;  %v4210_v40 = vld [vmem:[%s5131_s1 + $0x888] sm:$0xff] }
  0xf0   :  { %2737 = vmatpush.bf16.msrb.mxu2 %v4181_v41 }
  0xf1   :  { %2750 = vmatpush.bf16.msrb.mxu3 %v4189_v44  ;;  %v4201_v44 = vld [vmem:[%s5131_s1 + $0x840] sm:$0xff] }
  0xf2   :  { %2712 = vmatpush.bf16.msrb.mxu0 %v4164_v45  ;;  %v4209_v45 = vld [vmem:[%s5131_s1 + $0x880] sm:$0xff]  ;;  %s4245_s1 = smov [#allocation2]  }
  0xf3   :  { %2725 = vmatpush.bf16.msrb.mxu1 %v4172_v46  ;;  %v626_v46 = vld [vmem:[#allocation1] sm:$0xff]  ;;  %s2806_s7 = sshll.u32 %s4245_s1, 4  ;;  %s2807_s7 = int_to_ptr.vmem [resolvable:$true] %s2806_s7 }
  0xf4   :  { %2738 = vmatpush.bf16.msrb.mxu2 %v4180_v47  ;;  %v627_v47 = vld [vmem:[#allocation1 + $0x9] sm:$0xff] }
  0xf5   :  { %2751 = vmatpush.bf16.msrb.mxu3 %v4188_v50 }
  0xf6   :  { %2713 = vmatpush.bf16.msrb.mxu0 %v4163_v53 }
  0xf7   :  { %2726 = vmatpush.bf16.msrb.mxu1 %v4171_v55 }
  0xf8   :  { %2739 = vmatpush.bf16.msrb.mxu2 %v4179_v56 }
  0xf9   :  { %2752 = vmatpush.bf16.msrb.mxu3 %v4187_v58 }
  0xfa   :  { %2714 = vmatpush.bf16.msrb.mxu0 %v4162_v59 }
  0xfb   :  { %2727 = vmatpush.bf16.msrb.mxu1 %v4170_v60 }
  0xfc   :  { %2740 = vmatpush.bf16.msrb.mxu2 %v4178_v61 }
  0xfd   :  { %2753 = vmatpush.bf16.msrb.mxu3 %v4186_v4 }
  0xfe   :  { %2715 = vmatpush.bf16.msrb.mxu0 %v4161_v5  ;;  %v2509_v19 = vpop.f32.mrf.mxu0 }
  0xff   :  { %2728 = vmatpush.bf16.msrb.mxu1 %v4169_v7  ;;  %v2510_v20 = vadd.f32 %v2509_v19, %v2497_v54  ;;  %v2522_v22 = vpop.f32.mrf.mxu1 }
 0x100   :  { %2741 = vmatpush.bf16.msrb.mxu2 %v4177_v8 }
 0x101   :  { %2754 = vmatpush.bf16.msrb.mxu3 %v4185_v12  ;;  %2716 = vmatmul.bf16.vlgmr.msrb.gmra.mxu0 %v620_v62  ;;  %v2523_v25 = vadd.f32 %v2522_v22, %v2510_v20 }
 0x102   :  { %2760 = vmatpush.bf16.msra.mxu0 %v4200_v9  ;;  %2729 = vmatmul.bf16.vlgmr.msrb.gmra.mxu1 %v621_v0 }
 0x103   :  { %2773 = vmatpush.bf16.msra.mxu1 %v4208_v10  ;;  %2742 = vmatmul.bf16.vlgmr.msrb.gmra.mxu2 %v622_v63 }
 0x104   :  { %2786 = vmatpush.bf16.msra.mxu2 %v4216_v11  ;;  %2755 = vmatmul.bf16.vlgmr.msrb.gmra.mxu3 %v623_v1 }
 0x106   :  { %2761 = vmatpush.bf16.msra.mxu0 %v4199_v13  ;;  %v2535_v29 = vpop.f32.mrf.mxu2  ;;  %v2511_v32 = vpop.f32.mrf.mxu0 }
 0x107   :  { %2774 = vmatpush.bf16.msra.mxu1 %v4207_v14  ;;  %v2536_v30 = vadd.f32 %v2535_v29, %v2523_v25  ;;  %v2548_v31 = vpop.f32.mrf.mxu3  ;;  %v2524_v34 = vpop.f32.mrf.mxu1 }
 0x108   :  { %2787 = vmatpush.bf16.msra.mxu2 %v4215_v15 }
 0x109   :  { %v2549_v35 = vadd.f32 %v2548_v31, %v2536_v30 }
 0x10a   :  { %2762 = vmatpush.bf16.msra.mxu0 %v4198_v16 }
 0x10b   :  { %2775 = vmatpush.bf16.msra.mxu1 %v4206_v17 }
 0x10c   :  { %2788 = vmatpush.bf16.msra.mxu2 %v4214_v18 }
 0x10e   :  { %2763 = vmatpush.bf16.msra.mxu0 %v4197_v21  ;;  %v2537_v41 = vpop.f32.mrf.mxu2 }
 0x10f   :  { %2776 = vmatpush.bf16.msra.mxu1 %v4205_v23  ;;  %v2550_v42 = vpop.f32.mrf.mxu3 }
 0x110   :  { %2789 = vmatpush.bf16.msra.mxu2 %v4213_v24 }
 0x112   :  { %2764 = vmatpush.bf16.msra.mxu0 %v4196_v26 }
 0x113   :  { %2777 = vmatpush.bf16.msra.mxu1 %v4204_v27 }
 0x114   :  { %2790 = vmatpush.bf16.msra.mxu2 %v4212_v28 }
 0x116   :  { %2765 = vmatpush.bf16.msra.mxu0 %v4195_v33 }
 0x117   :  { %2778 = vmatpush.bf16.msra.mxu1 %v4203_v36 }
 0x118   :  { %2791 = vmatpush.bf16.msra.mxu2 %v4211_v37 }
 0x11a   :  { %2766 = vmatpush.bf16.msra.mxu0 %v4194_v38 }
 0x11b   :  { %2779 = vmatpush.bf16.msra.mxu1 %v4202_v39 }
 0x11c   :  { %2792 = vmatpush.bf16.msra.mxu2 %v4210_v40 }
 0x11e   :  { %2767 = vmatpush.bf16.msra.mxu0 %v4193_v43  ;;  %v2561_v49 = vpop.f32.mrf.mxu0 }
 0x11f   :  { %2780 = vmatpush.bf16.msra.mxu1 %v4201_v44  ;;  %v2562_v50 = vadd.f32 %v2561_v49, %v2549_v35  ;;  %v2574_v51 = vpop.f32.mrf.mxu1 }
 0x120   :  { %2793 = vmatpush.bf16.msra.mxu2 %v4209_v45 }
 0x121   :  { %2768 = vmatmul.bf16.vlgmr.msra.gmra.mxu0 %v626_v46  ;;  %v2575_v52 = vadd.f32 %v2574_v51, %v2562_v50 }
 0x122   :  { %2781 = vmatmul.bf16.vlgmr.msra.gmra.mxu1 %v627_v47 }
 0x123   :  { %2794 = vmatmul.bf16.vlgmr.msra.gmra.mxu2 %v628_v48 }
 0x126   :  { %v2587_v53 = vpop.f32.mrf.mxu2  ;;  %v2563_v56 = vpop.f32.mrf.mxu0 }
 0x127   :  { %v2588_v54 = vadd.f32 %v2587_v53, %v2575_v52  ;;  %v2600_v55 = vpop.f32.mrf.mxu3  ;;  %v2576_v58 = vpop.f32.mrf.mxu1 }
 0x129   :  { %v2601_v57 = vadd.f32 %v2600_v55, %v2588_v54 }
 0x12e   :  { %v2589_v59 = vpop.f32.mrf.mxu2 }
 0x12f   :  { %v2602_v60 = vpop.f32.mrf.mxu3 }
 0x13e   :  { %v2613_v61 = vpop.f32.mrf.mxu0 }
 0x13f   :  { %v2614_v62 = vadd.f32 %v2613_v61, %v2601_v57  ;;  %v2626_v63 = vpop.f32.mrf.mxu1 }
 0x141   :  { %v2627_v0 = vadd.f32 %v2626_v63, %v2614_v62 }
 0x146   :  { %v2639_v1 = vpop.f32.mrf.mxu2  ;;  %v2615_v4 = vpop.f32.mrf.mxu0 }
 0x147   :  { %v2640_v2 = vadd.f32 %v2639_v1, %v2627_v0  ;;  %v2652_v3 = vpop.f32.mrf.mxu3  ;;  %v2628_v6 = vpop.f32.mrf.mxu1 }
 0x149   :  { %v2653_v5 = vadd.f32 %v2652_v3, %v2640_v2 }
 0x14e   :  { %v2641_v7 = vpop.f32.mrf.mxu2 }
 0x14f   :  { %v2654_v8 = vpop.f32.mrf.mxu3 }
 0x15e   :  { %v2665_v9 = vpop.f32.mrf.mxu0 }
 0x15f   :  { %v2678_v10 = vpop.f32.mrf.mxu1  ;;  %v2666_v20 = vadd.f32 %v2665_v9, %v2653_v5 }
 0x161   :  { %v2679_v24 = vadd.f32 %v2678_v10, %v2666_v20 }
 0x166   :  { %v2691_v11 = vpop.f32.mrf.mxu2  ;;  %v2667_v13 = vpop.f32.mrf.mxu0 }
 0x167   :  { %v2704_v12 = vpop.f32.mrf.mxu3  ;;  %v2680_v14 = vpop.f32.mrf.mxu1  ;;  %v2692_v25 = vadd.f32 %v2691_v11, %v2679_v24 }
 0x169   :  { %v2705_v28 = vadd.f32 %v2704_v12, %v2692_v25 }
 0x16e   :  { %v2693_v15 = vpop.f32.mrf.mxu2 }
 0x16f   :  { %v2706_v16 = vpop.f32.mrf.mxu3 }
 0x17e   :  { %v2717_v17 = vpop.f32.mrf.mxu0 }
 0x17f   :  { %v2730_v18 = vpop.f32.mrf.mxu1  ;;  %v2718_v29 = vadd.f32 %v2717_v17, %v2705_v28 }
 0x181   :  { %v2731_v30 = vadd.f32 %v2730_v18, %v2718_v29 }
 0x186   :  { %v2743_v19 = vpop.f32.mrf.mxu2  ;;  %v2719_v22 = vpop.f32.mrf.mxu0 }
 0x187   :  { %v2756_v21 = vpop.f32.mrf.mxu3  ;;  %v2732_v23 = vpop.f32.mrf.mxu1  ;;  %v2744_v31 = vadd.f32 %v2743_v19, %v2731_v30 }
 0x189   :  { %v2757_v32 = vadd.f32 %v2756_v21, %v2744_v31 }
 0x18e   :  { %v2745_v26 = vpop.f32.mrf.mxu2 }
 0x18f   :  { %v2758_v27 = vpop.f32.mrf.mxu3 }
 0x19e   :  { %v2769_v33 = vpop.f32.mrf.mxu0 }
 0x19f   :  { %v2782_v34 = vpop.f32.mrf.mxu1  ;;  %v2770_v35 = vadd.f32 %v2769_v33, %v2757_v32 }
 0x1a1   :  { %v2783_v36 = vadd.f32 %v2782_v34, %v2770_v35 }
 0x1a6   :  { %v2795_v37 = vpop.f32.mrf.mxu2  ;;  %v2771_v39 = vpop.f32.mrf.mxu0 }
 0x1a7   :  { %v2796_v38 = vadd.f32 %v2795_v37, %v2783_v36  ;;  %v2784_v40 = vpop.f32.mrf.mxu1 }
 0x1a9   :  { %2800 = vst.msk [vmem:[#allocation2] sm:$0x3] %vm2799_vm0, %v2796_v38 }
 0x1aa   :  { %2811 = dma.vmem_to_hbm [thread:$0]  %s2807_s7, 32, %s2809_s10, [#allocation3]  }
 0x1ae   :  { %v2797_v41 = vpop.f32.mrf.mxu2 }
 0x1af   :  { %4243 = dma.done.wait [#allocation3], 32  }
 0x1b0   :  { %4244 = vsyncadd [#allocation3], 4294967264 }
 0x1b1   :  { %2816 = vsyncpa [#allocation3], 1 }

</bundles_post_ra>
